<compile_context>
chip_gen: v5e
topology: v5e:2x2
jax: 0.10.0
libtpu: 0.0.40
codegen_flags: <defaults>
</compile_context>

<pallas_src>
import math

import jax
import jax.numpy as jnp
import numpy as np
from jax.experimental import pallas as pl
from jax.experimental.pallas import tpu as pltpu

# ----------------------------- model config ---------------------------------
BATCH = 2
SEQ = 8
HIDDEN = 32
LN_EPS = 1e-12
_GELU_C = math.sqrt(2.0 / math.pi)


# ------------------------------ shared math ----------------------------------
def _gelu(x):
    # Same tanh-approx GELU as the PyTorch module; x*x*x keeps the cube on the
    # VALU, tanh rides the single EUP slot.
    return x * 0.5 * (1.0 + jnp.tanh(_GELU_C * (x + 0.044715 * (x * x * x))))


# --------------------- kernel 1: lane-dense packed (small H) -----------------
def _packed_kernel(x_ref, wblk_ref, mblk_ref, vecs_ref, out_ref):
    # x_ref    : (R, 128)   P = 128 // H logical rows packed per lane-row
    # wblk_ref : (128, 128) block-diagonal dense weight  kron(I_P, W), (in, out)
    # mblk_ref : (128, 128) block-diagonal within-chunk averaging matrix
    # vecs_ref : (3, 128)   row 0 = dense bias, 1 = LN weight, 2 = LN bias (tiled xP)
    x = x_ref[...]
    b = vecs_ref[0:1, :]
    ln_w = vecs_ref[1:2, :]
    ln_b = vecs_ref[2:3, :]

    # dense + GELU (full 128-lane MXU matmul, f32 accumulation)
    h = jnp.dot(x, wblk_ref[...], preferred_element_type=jnp.float32) + b
    h = _gelu(h)

    # FastLayerNorm over each H-wide chunk; block-diag averaging matmuls keep the
    # reductions lane-dense on the MXU.  Two-pass variance kept for stability.
    m = mblk_ref[...]
    u = jnp.dot(h, m, preferred_element_type=jnp.float32)        # per-chunk mean
    d = h - u
    s = jnp.dot(d * d, m, preferred_element_type=jnp.float32)    # per-chunk var
    y = d * jax.lax.rsqrt(s + LN_EPS)
    out_ref[...] = (ln_w * y + ln_b).astype(out_ref.dtype)       # unmasked vst


# ------------------ kernel 2: row-tiled production path (H % 128 == 0) -------
def _tiled_kernel(x_ref, w_ref, vecs_ref, out_ref):
    # x_ref: (TM, H) bf16 row tile; w_ref: (H, H) bf16, VMEM-resident across steps.
    b = vecs_ref[0:1, :]
    ln_w = vecs_ref[1:2, :]
    ln_b = vecs_ref[2:3, :]
    h = jnp.dot(x_ref[...], w_ref[...], preferred_element_type=jnp.float32) + b
    h = _gelu(h)                                    # elementwise kept in f32
    u = jnp.mean(h, axis=-1, keepdims=True)
    d = h - u
    s = jnp.mean(d * d, axis=-1, keepdims=True)     # two-pass variance
    y = d * jax.lax.rsqrt(s + LN_EPS)
    out_ref[...] = (ln_w * y + ln_b).astype(out_ref.dtype)


# -------------------------------- wrappers ------------------------------------
def _packed_call(x2, w, b, ln_w, ln_b):
    N, H = x2.shape
    P = 128 // H
    R = N // P
    dt = x2.dtype
    xp = x2.reshape(R, P * H)                                     # lane-dense slab
    eye = jnp.eye(P, dtype=dt)
    w_blk = jnp.kron(eye, w.astype(dt))                           # (128, 128)
    m_blk = jnp.kron(eye, jnp.full((H, H), 1.0 / H, dtype=dt))    # (128, 128)
    vecs = jnp.stack([jnp.tile(b, P), jnp.tile(ln_w, P), jnp.tile(ln_b, P)], axis=0)

    cost = pl.CostEstimate(
        flops=2 * N * H * H + 4 * R * (P * H) ** 2,
        transcendentals=2 * N * H,
        bytes_accessed=int(4 * (xp.size + w_blk.size + m_blk.size + vecs.size + xp.size)))
    out = pl.pallas_call(
        _packed_kernel,
        out_shape=jax.ShapeDtypeStruct((R, P * H), dt),
        in_specs=[pl.BlockSpec(memory_space=pltpu.MemorySpace.VMEM)] * 4,
        out_specs=pl.BlockSpec(memory_space=pltpu.MemorySpace.VMEM),
        cost_estimate=cost,
    )(xp, w_blk, m_blk, vecs)
    return out.reshape(N, H)


def _tiled_call(x2, w, b, ln_w, ln_b, *, tm=512):
    # Production shapes (H = 768/1024).  TM=512 keeps double-buffered x/out tiles
    # + the resident (H,H) bf16 weight comfortably inside v7x's 64 MiB VMEM.
    N, H = x2.shape
    TM = N if N <= tm else tm
    x_bf = x2.astype(jnp.bfloat16)        # bf16 MXU operands, f32 accumulation
    w_bf = w.astype(jnp.bfloat16)         # halves the resident-weight footprint/DMA
    vecs = jnp.stack([b, ln_w, ln_b], axis=0).astype(jnp.float32)
    cost = pl.CostEstimate(
        flops=2 * N * H * H,
        transcendentals=2 * N * H,
        bytes_accessed=int(2 * x_bf.size + 2 * w_bf.size + 4 * vecs.size + 4 * N * H))
    return pl.pallas_call(
        _tiled_kernel,
        out_shape=jax.ShapeDtypeStruct((N, H), x2.dtype),
        grid=(pl.cdiv(N, TM),),
        in_specs=[pl.BlockSpec((TM, H), lambda i: (i, 0)),
                  pl.BlockSpec((H, H), lambda i: (0, 0)),    # weight DMA'd once, stays resident
                  pl.BlockSpec((3, H), lambda i: (0, 0))],
        out_specs=pl.BlockSpec((TM, H), lambda i: (i, 0)),
        compiler_params=pltpu.CompilerParams(
            dimension_semantics=("parallel",),               # v7x: both TCs split row tiles
            vmem_limit_bytes=64 << 20),
        cost_estimate=cost,
    )(x_bf, w_bf, vecs)


def bert_prediction_head_transform(x, w, b, ln_w, ln_b):
    """x: (B, S, H) f32;  w: (H, H) stored (in, out) == torch weight.T;  b/ln_w/ln_b: (H,)."""
    B, S, H = x.shape
    N = B * S
    x2 = x.reshape(N, H)
    if H % 128 == 0:
        out = _tiled_call(x2, w, b, ln_w, ln_b)
    elif 128 % H == 0 and N % (128 // H) == 0:
        out = _packed_call(x2, w, b, ln_w, ln_b)
    else:
        # TODO(synk): pad H up to a lane multiple (with a masked LN reduction) for
        # hidden sizes that neither divide nor are a multiple of 128.
        raise NotImplementedError(f"unsupported hidden size {H}")
    return out.reshape(B, S, H)


# --------------------------- pure-JAX reference --------------------------------
def reference_transform(x, w, b, ln_w, ln_b):
    h = x @ w + b
    h = _gelu(h)
    u = jnp.mean(h, axis=-1, keepdims=True)
    s = jnp.mean((h - u) ** 2, axis=-1, keepdims=True)
    return ln_w * ((h - u) / jnp.sqrt(s + LN_EPS)) + ln_b


# ---------------------------------- main ---------------------------------------
if __name__ == "__main__":
    key = jax.random.PRNGKey(0)
    k_x, k_w, k_b, k_lw, k_lb = jax.random.split(key, 5)

    x = jax.random.normal(k_x, (BATCH, SEQ, HIDDEN), jnp.float32)

    # dense: weight stored as (in, out) == torch weight.T, bias (H,)
    w = 0.02 * jax.random.normal(k_w, (HIDDEN, HIDDEN), jnp.float32)
    b = 0.02 * jax.random.normal(k_b, (HIDDEN,), jnp.float32)
    # FastLayerNorm params (perturbed from init so the test exercises them)
    ln_w = 1.0 + 0.1 * jax.random.normal(k_lw, (HIDDEN,), jnp.float32)
    ln_b = 0.1 * jax.random.normal(k_lb, (HIDDEN,), jnp.float32)

    out = bert_prediction_head_transform(x, w, b, ln_w, ln_b)
    out = jax.block_until_ready(out)

    ref = jax.block_until_ready(reference_transform(x, w, b, ln_w, ln_b))
    np.testing.assert_allclose(np.asarray(out), np.asarray(ref), atol=1e-4, rtol=1e-4)

    print("KERNEL_OK")
</pallas_src>

<mosaic_0001>
module attributes {stable_mosaic.version = 11 : i64} {
  func.func @_packed_kernel(%arg0: memref<4x128xf32, #tpu.memory_space<vmem>>, %arg1: memref<128x128xf32, #tpu.memory_space<vmem>>, %arg2: memref<128x128xf32, #tpu.memory_space<vmem>>, %arg3: memref<3x128xf32, #tpu.memory_space<vmem>>, %arg4: memref<4x128xf32, #tpu.memory_space<vmem>>) attributes {dimension_semantics = [], scalar_prefetch = 0 : i64, scratch_operands = 0 : i64, tpu.core_type = #tpu.core_type<tc>} {
    %c0 = arith.constant 0 : index
    %c0_0 = arith.constant 0 : index
    %0 = vector.load %arg0[%c0, %c0_0] : memref<4x128xf32, #tpu.memory_space<vmem>>, vector<4x128xf32>
    %c0_1 = arith.constant 0 : index
    %c0_2 = arith.constant 0 : index
    %1 = vector.load %arg3[%c0_1, %c0_2] : memref<3x128xf32, #tpu.memory_space<vmem>>, vector<1x128xf32>
    %c1 = arith.constant 1 : index
    %c0_3 = arith.constant 0 : index
    %2 = vector.load %arg3[%c1, %c0_3] : memref<3x128xf32, #tpu.memory_space<vmem>>, vector<1x128xf32>
    %c2 = arith.constant 2 : index
    %c0_4 = arith.constant 0 : index
    %3 = vector.load %arg3[%c2, %c0_4] : memref<3x128xf32, #tpu.memory_space<vmem>>, vector<1x128xf32>
    %c0_5 = arith.constant 0 : index
    %c0_6 = arith.constant 0 : index
    %4 = vector.load %arg1[%c0_5, %c0_6] : memref<128x128xf32, #tpu.memory_space<vmem>>, vector<128x128xf32>
    %cst = arith.constant dense<0.000000e+00> : vector<4x128xf32>
    %5 = tpu.matmul %0, %4, %cst {dimension_numbers = #tpu.dot_dimension_numbers<[1], [0], [0], [1], [0, 0, 1, 1], [], []>} : vector<4x128xf32>, vector<128x128xf32>, vector<4x128xf32> -> vector<4x128xf32>
    %6 = vector.broadcast %1 : vector<1x128xf32> to vector<4x128xf32>
    %7 = arith.addf %5, %6 : vector<4x128xf32>
    %cst_7 = arith.constant 5.000000e-01 : f32
    %8 = vector.broadcast %cst_7 : f32 to vector<4x128xf32>
    %9 = arith.mulf %7, %8 : vector<4x128xf32>
    %10 = arith.mulf %7, %7 : vector<4x128xf32>
    %11 = arith.mulf %10, %7 : vector<4x128xf32>
    %cst_8 = arith.constant 4.471500e-02 : f32
    %12 = vector.broadcast %cst_8 : f32 to vector<4x128xf32>
    %13 = arith.mulf %12, %11 : vector<4x128xf32>
    %14 = arith.addf %7, %13 : vector<4x128xf32>
    %cst_9 = arith.constant 0.797884583 : f32
    %15 = vector.broadcast %cst_9 : f32 to vector<4x128xf32>
    %16 = arith.mulf %15, %14 : vector<4x128xf32>
    %17 = math.tanh %16 : vector<4x128xf32>
    %cst_10 = arith.constant 1.000000e+00 : f32
    %18 = vector.broadcast %cst_10 : f32 to vector<4x128xf32>
    %19 = arith.addf %18, %17 : vector<4x128xf32>
    %20 = arith.mulf %9, %19 : vector<4x128xf32>
    %c0_11 = arith.constant 0 : index
    %c0_12 = arith.constant 0 : index
    %21 = vector.load %arg2[%c0_11, %c0_12] : memref<128x128xf32, #tpu.memory_space<vmem>>, vector<128x128xf32>
    %cst_13 = arith.constant dense<0.000000e+00> : vector<4x128xf32>
    %22 = tpu.matmul %20, %21, %cst_13 {dimension_numbers = #tpu.dot_dimension_numbers<[1], [0], [0], [1], [0, 0, 1, 1], [], []>} : vector<4x128xf32>, vector<128x128xf32>, vector<4x128xf32> -> vector<4x128xf32>
    %23 = arith.subf %20, %22 : vector<4x128xf32>
    %24 = arith.mulf %23, %23 : vector<4x128xf32>
    %cst_14 = arith.constant dense<0.000000e+00> : vector<4x128xf32>
    %25 = tpu.matmul %24, %21, %cst_14 {dimension_numbers = #tpu.dot_dimension_numbers<[1], [0], [0], [1], [0, 0, 1, 1], [], []>} : vector<4x128xf32>, vector<128x128xf32>, vector<4x128xf32> -> vector<4x128xf32>
    %cst_15 = arith.constant 9.99999996E-13 : f32
    %26 = vector.broadcast %cst_15 : f32 to vector<4x128xf32>
    %27 = arith.addf %25, %26 : vector<4x128xf32>
    %28 = math.rsqrt %27 : vector<4x128xf32>
    %29 = arith.mulf %23, %28 : vector<4x128xf32>
    %30 = vector.broadcast %2 : vector<1x128xf32> to vector<4x128xf32>
    %31 = arith.mulf %30, %29 : vector<4x128xf32>
    %32 = vector.broadcast %3 : vector<1x128xf32> to vector<4x128xf32>
    %33 = arith.addf %31, %32 : vector<4x128xf32>
    %c0_16 = arith.constant 0 : index
    %c0_17 = arith.constant 0 : index
    %34 = vector.load %arg4[%c0_16, %c0_17] : memref<4x128xf32, #tpu.memory_space<vmem>>, vector<4x128xf32>
    tpu.vector_store %arg4[%c0_16, %c0_17], %33 {strides = array<i32>} : memref<4x128xf32, #tpu.memory_space<vmem>>, vector<4x128xf32>,
    return
  }
}

</mosaic_0001>

<bundles_post_ra>
// kernel: tpu_custom_call.1
= control target key start
LH: loop header
LB: loop body
LE: loop exit
PB: predicated region body
PF: predicated region fallthrough
CT: control target
= control target key end

     0   :  { %9 = vsyncpa [#allocation3], 0  ;;  %s409_s0 = inlined_call_operand.hbm [shape: f32[4,128], index: 0, kind: input, shape index: {}]   ;;  %s410_s1 = inlined_call_operand.hbm [shape: f32[128,128], index: 1, kind: input, shape index: {}]   ;;  %s411_s2 = inlined_call_operand.hbm [shape: f32[128,128], index: 2, kind: input, shape index: {}]   ;;  %s412_s3 = inlined_call_operand.hbm [shape: f32[3,128], index: 3, kind: input, shape index: {}]   ;;  %s413_s4 = inlined_call_operand.hbm [shape: f32[4,128], index: 4, kind: output, shape index: {}]  }
   0x1   :  { %10 = vsyncpa [#allocation6], 0 }
   0x2   :  { %11 = vsyncpa [#allocation9], 0  ;;  %s28_s17 = sshll.u32 %s410_s1, 4  ;;  %s29_s17 = int_to_ptr.hbm [resolvable:$true] %s28_s17 }
   0x3   :  { %12 = vsyncpa [#allocation4], 0  ;;  %s362_s18 = smov [#allocation5]   ;;  %s18_s22 = sshll.u32 %s409_s0, 4  ;;  %s19_s22 = int_to_ptr.hbm [resolvable:$true] %s18_s22 }
   0x4   :  { %s30_s19 = sshll.u32 %s362_s18, 4  ;;  %s363_s23 = smov 128   ;;  %s31_s19 = int_to_ptr.vmem [resolvable:$true] %s30_s19 }
   0x5   :  { %s364_s24 = smov 8   ;;  %s365_s25 = smov [#allocation2]  }
   0x6   :  { %36 = dma.hbm_to_vmem [thread:$0]  %s29_s17, 2048, %s31_s19, [#allocation6], %s363_s23, %s363_s23, %s364_s24  }
   0x7   :  { %s20_s26 = sshll.u32 %s365_s25, 4  ;;  %s41_s29 = sshll.u32 %s411_s2, 4  ;;  %s21_s26 = int_to_ptr.vmem [resolvable:$true] %s20_s26  ;;  %s42_s29 = int_to_ptr.hbm [resolvable:$true] %s41_s29 }
   0x8   :  { %23 = dma.hbm_to_vmem [thread:$0]  %s19_s22, 64, %s21_s26, [#allocation3]  }
   0x9   :  { %s55_s5 = sshll.u32 %s412_s3, 4  ;;  %s366_s6 = smov [#allocation7]   ;;  %s56_s5 = int_to_ptr.hbm [resolvable:$true] %s55_s5 }
   0xa   :  { %s43_s7 = sshll.u32 %s366_s6, 4  ;;  %s367_s0 = smov [#allocation8]   ;;  %s44_s7 = int_to_ptr.vmem [resolvable:$true] %s43_s7 }
   0xb   :  { %49 = dma.hbm_to_vmem [thread:$0]  %s42_s29, 2048, %s44_s7, [#allocation6], %s363_s23, %s363_s23, %s364_s24  }
   0xc   :  { %s57_s8 = sshll.u32 %s367_s0, 4  ;;  %s58_s8 = int_to_ptr.vmem [resolvable:$true] %s57_s8 }
   0xd   :  { %60 = dma.hbm_to_vmem [thread:$0]  %s56_s5, 64, %s58_s8, [#allocation9]  }
   0xe   :  { %354 = dma.done.wait [#allocation3], 64  }
   0xf   :  { %355 = vsyncadd [#allocation3], 4294967232 }
  0x10   :  { %356 = dma.done.wait [#allocation6], 4096  }
  0x11   :  { %357 = vsyncadd [#allocation6], 4294963200 }
  0x12   :  { %358 = dma.done.wait [#allocation9], 64  }
  0x13   :  { %359 = vsyncadd [#allocation9], 4294967232  ;;  %v96_v0 = vld [vmem:[#allocation5 + $0x78] sm:$0xff]  ;;  %v95_v1 = vld [vmem:[#allocation5 + $0x70] sm:$0xff]  ;;  %s368_s2 = smov [#allocation10]   ;;  %s208_s11 = sshll.u32 %s413_s4, 4  ;;  %s209_s11 = int_to_ptr.hbm [resolvable:$true] %s208_s11 }
  0x14   :  { %98 = vmatpush.msra.mxu0 %v96_v0  ;;  %v94_v2 = vld [vmem:[#allocation5 + $0x68] sm:$0xff]  ;;  %v93_v3 = vld [vmem:[#allocation5 + $0x60] sm:$0xff]  ;;  %v142_v4 = vld [vmem:[#allocation7 + $0x78] sm:$0xff]  ;;  %s206_s3 = sshll.u32 %s368_s2, 4  ;;  %s207_s3 = int_to_ptr.vmem [resolvable:$true] %s206_s3 }
  0x15   :  { %v92_v5 = vld [vmem:[#allocation5 + $0x58] sm:$0xff]  ;;  %143 = vmatpush.msra.mxu1 %v142_v4  ;;  %v141_v6 = vld [vmem:[#allocation7 + $0x70] sm:$0xff]  ;;  %165 = vmatpush.msra.mxu2 %v142_v4  ;;  %v140_v7 = vld [vmem:[#allocation7 + $0x68] sm:$0xff] }
  0x16   :  { %99 = vmatpush.msra.mxu0 %v95_v1  ;;  %v91_v8 = vld [vmem:[#allocation5 + $0x50] sm:$0xff]  ;;  %v139_v9 = vld [vmem:[#allocation7 + $0x60] sm:$0xff]  ;;  %v90_v10 = vld [vmem:[#allocation5 + $0x48] sm:$0xff] }
  0x17   :  { %144 = vmatpush.msra.mxu1 %v141_v6  ;;  %166 = vmatpush.msra.mxu2 %v141_v6  ;;  %v89_v11 = vld [vmem:[#allocation5 + $0x40] sm:$0xff]  ;;  %v88_v12 = vld [vmem:[#allocation5 + $0x38] sm:$0xff]  ;;  %v87_v13 = vld [vmem:[#allocation5 + $0x30] sm:$0xff] }
  0x18   :  { %100 = vmatpush.msra.mxu0 %v94_v2  ;;  %v86_v14 = vld [vmem:[#allocation5 + $0x28] sm:$0xff]  ;;  %v85_v15 = vld [vmem:[#allocation5 + $0x20] sm:$0xff]  ;;  %v84_v16 = vld [vmem:[#allocation5 + $0x18] sm:$0xff] }
  0x19   :  { %145 = vmatpush.msra.mxu1 %v140_v7  ;;  %167 = vmatpush.msra.mxu2 %v140_v7  ;;  %v83_v17 = vld [vmem:[#allocation5 + $0x10] sm:$0xff]  ;;  %v82_v18 = vld [vmem:[#allocation5 + $0x8] sm:$0xff]  ;;  %v81_v19 = vld [vmem:[#allocation5] sm:$0xff] }
  0x1a   :  { %101 = vmatpush.msra.mxu0 %v93_v3  ;;  %v77_v20 = vld [vmem:[#allocation2] sm:$0xf]  ;;  %v137_v22 = vld [vmem:[#allocation7 + $0x50] sm:$0xff]  ;;  %v136_v23 = vld [vmem:[#allocation7 + $0x48] sm:$0xff] }
  0x1b   :  { %146 = vmatpush.msra.mxu1 %v139_v9  ;;  %168 = vmatpush.msra.mxu2 %v139_v9  ;;  %v138_v21 = vld [vmem:[#allocation7 + $0x58] sm:$0xff]  ;;  %v135_v24 = vld [vmem:[#allocation7 + $0x40] sm:$0xff]  ;;  %v133_v26 = vld [vmem:[#allocation7 + $0x30] sm:$0xff] }
  0x1c   :  { %102 = vmatpush.msra.mxu0 %v92_v5  ;;  %v134_v25 = vld [vmem:[#allocation7 + $0x38] sm:$0xff]  ;;  %v132_v27 = vld [vmem:[#allocation7 + $0x28] sm:$0xff]  ;;  %v131_v28 = vld [vmem:[#allocation7 + $0x20] sm:$0xff] }
  0x1d   :  { %147 = vmatpush.msra.mxu1 %v138_v21  ;;  %169 = vmatpush.msra.mxu2 %v138_v21  ;;  %v130_v29 = vld [vmem:[#allocation7 + $0x18] sm:$0xff]  ;;  %v129_v30 = vld [vmem:[#allocation7 + $0x10] sm:$0xff]  ;;  %v128_v31 = vld [vmem:[#allocation7 + $0x8] sm:$0xff] }
  0x1e   :  { %103 = vmatpush.msra.mxu0 %v91_v8  ;;  %v127_v32 = vld [vmem:[#allocation7] sm:$0xff] }
  0x1f   :  { %148 = vmatpush.msra.mxu1 %v137_v22  ;;  %170 = vmatpush.msra.mxu2 %v137_v22  ;;  %v227_v33 = vld [vmem:[#allocation8] ss:$0 sm:$0xff]  ;;  %v228_v56 = vld [vmem:[#allocation8 + $0x1] ss:$0 sm:$0xff]  ;;  %v229_v59 = vld [vmem:[#allocation8 + $0x2] ss:$0 sm:$0xff] }
  0x20   :  { %104 = vmatpush.msra.mxu0 %v90_v10 }
  0x21   :  { %149 = vmatpush.msra.mxu1 %v136_v23  ;;  %171 = vmatpush.msra.mxu2 %v136_v23 }
  0x22   :  { %105 = vmatpush.msra.mxu0 %v89_v11 }
  0x23   :  { %150 = vmatpush.msra.mxu1 %v135_v24  ;;  %172 = vmatpush.msra.mxu2 %v135_v24 }
  0x24   :  { %106 = vmatpush.msra.mxu0 %v88_v12 }
  0x25   :  { %151 = vmatpush.msra.mxu1 %v134_v25  ;;  %173 = vmatpush.msra.mxu2 %v134_v25 }
  0x26   :  { %107 = vmatpush.msra.mxu0 %v87_v13 }
  0x27   :  { %152 = vmatpush.msra.mxu1 %v133_v26  ;;  %174 = vmatpush.msra.mxu2 %v133_v26 }
  0x28   :  { %108 = vmatpush.msra.mxu0 %v86_v14 }
  0x29   :  { %153 = vmatpush.msra.mxu1 %v132_v27  ;;  %175 = vmatpush.msra.mxu2 %v132_v27 }
  0x2a   :  { %109 = vmatpush.msra.mxu0 %v85_v15 }
  0x2b   :  { %154 = vmatpush.msra.mxu1 %v131_v28  ;;  %176 = vmatpush.msra.mxu2 %v131_v28 }
  0x2c   :  { %110 = vmatpush.msra.mxu0 %v84_v16 }
  0x2d   :  { %155 = vmatpush.msra.mxu1 %v130_v29  ;;  %177 = vmatpush.msra.mxu2 %v130_v29 }
  0x2e   :  { %111 = vmatpush.msra.mxu0 %v83_v17 }
  0x2f   :  { %156 = vmatpush.msra.mxu1 %v129_v30  ;;  %178 = vmatpush.msra.mxu2 %v129_v30 }
  0x30   :  { %112 = vmatpush.msra.mxu0 %v82_v18 }
  0x31   :  { %157 = vmatpush.msra.mxu1 %v128_v31  ;;  %179 = vmatpush.msra.mxu2 %v128_v31 }
  0x32   :  { %113 = vmatpush.msra.mxu0 %v81_v19 }
  0x33   :  { %114 = vmatmul.f32.vlgmr.msra.gmra.mxu0 %v77_v20  ;;  %158 = vmatpush.msra.mxu1 %v127_v32 }
  0x34   :  { %180 = vmatpush.msra.mxu2 %v127_v32 }
  0xb0   :  { %v115_v34 = vpop.f32.mrf.mxu0 }
  0xb1   :  { %v116_v35 = vadd.f32 %v227_v33, %v115_v34 }
  0xb3   :  { %v119_v36 = vmul.f32 %v116_v35, %v116_v35  ;;  %v118_v42 = vmul.f32 0.5, %v116_v35 }
  0xb5   :  { %v120_v37 = vmul.f32 %v119_v36, %v116_v35 }
  0xb7   :  { %v121_v38 = vmul.f32 0.044715, %v120_v37 }
  0xb9   :  { %v122_v39 = vadd.f32 %v121_v38, %v116_v35 }
  0xbb   :  { %v123_v40 = vmul.f32 0.7978846, %v122_v39 }
  0xbd   :  { %230 = vtanh.f32 %v123_v40 }
  0xc3   :  { %v231_v41 = vpop.eup %230 }
  0xc4   :  { %v125_v43 = vadd.f32 1.0, %v231_v41 }
  0xc6   :  { %v126_v44 = vmul.f32 %v125_v43, %v118_v42 }
  0xc8   :  { %159 = vmatmul.f32.vlgmr.msra.gmra.mxu1 %v126_v44 }
 0x145   :  { %v160_v45 = vpop.f32.mrf.mxu1 }
 0x146   :  { %v163_v46 = vsub.f32 %v126_v44, %v160_v45 }
 0x148   :  { %v164_v47 = vmul.f32 %v163_v46, %v163_v46 }
 0x14a   :  { %181 = vmatmul.f32.vlgmr.msra.gmra.mxu2 %v164_v47 }
 0x1cd   :  { %v182_v48 = vpop.f32.mrf.mxu2 }
 0x1ce   :  { %v183_v49 = vadd.f32 1e-12, %v182_v48 }
 0x1d0   :  { %232 = vrsqrt.f32 %v183_v49  ;;  %vm191_vm1 = vweird.f32 %v183_v49 }
 0x1d6   :  { %v233_v50 = vpop.eup %232 }
 0x1d7   :  { %v186_v51 = vmul.f32 %v233_v50, %v183_v49  ;;  %vm192_vm0 = vweird.f32 %v233_v50 }
 0x1d8   :  { %vm193_vm2 = vmor %vm191_vm1, %vm192_vm0 }
 0x1d9   :  { %v187_v52 = vmul.f32 %v233_v50, %v186_v51 }
 0x1db   :  { %v188_v53 = vmul.f32 0.5, %v187_v52 }
 0x1dd   :  { %v189_v54 = vsub.f32 1.5, %v188_v53 }
 0x1df   :  { %v190_v55 = vmul.f32 %v233_v50, %v189_v54 }
 0x1e1   :  { %v194_v57 = vsel %vm193_vm2, %v233_v50, %v190_v55 }
 0x1e2   :  { %v195_v58 = vmul.f32 %v194_v57, %v163_v46 }
 0x1e4   :  { %v197_v60 = vmul.f32 %v228_v56, %v195_v58 }
 0x1e6   :  { %v199_v61 = vadd.f32 %v229_v59, %v197_v60 }
 0x1e8   :  { %200 = vst [vmem:[#allocation10] sm:$0xf] %v199_v61 }
 0x1e9   :  { %211 = dma.vmem_to_hbm [thread:$0]  %s207_s3, 64, %s209_s11, [#allocation4]  }
 0x1ea   :  { %360 = dma.done.wait [#allocation4], 64  }
 0x1eb   :  { %361 = vsyncadd [#allocation4], 4294967232 }
 0x1ec   :  { %216 = vsyncpa [#allocation3], 1 }
 0x1ed   :  { %217 = vsyncpa [#allocation6], 1 }
 0x1ee   :  { %218 = vsyncpa [#allocation9], 1 }
 0x1ef   :  { %219 = vsyncpa [#allocation4], 1 }

</bundles_post_ra>
